<compile_context>
chip_gen: v7x
topology: tpu7x:2x2x1
jax: 0.10.0
libtpu: 0.0.40
codegen_flags: <defaults>
</compile_context>

<pallas_src>
import functools

import jax
import jax.numpy as jnp
from jax.experimental import pallas as pl
from jax.experimental.pallas import tpu as pltpu


# ---------------------------------------------------------------------------
# Activation helper (f32 math; Tanh/Sigmoid lower to the EUP slot)
# ---------------------------------------------------------------------------
def _apply_activation(y, activation):
    if activation is None:
        return y
    if activation == "ReLU":
        return jnp.maximum(y, 0.0)
    if activation == "Tanh":
        return jnp.tanh(y)
    if activation == "Sigmoid":
        return jax.nn.sigmoid(y)
    if activation == "LeakyReLU":
        return jnp.where(y >= 0.0, y, 0.01 * y)
    # TODO(synk): only ReLU/Tanh/Sigmoid/LeakyReLU/None activations are mapped.
    raise NotImplementedError(f"activation {activation!r}")


# ---------------------------------------------------------------------------
# Fused Pallas kernel: whole MLP forward for one batch tile
# ---------------------------------------------------------------------------
def _mlp_fused_kernel(*refs, layer_meta):
    """refs = (x_ref, *param_refs, o_ref).

    For each layer, param_refs contributes (w_main, [w_skip], bias); w_skip is
    present iff that layer has an input-skip.  layer_meta is a static tuple of
    (has_skip: bool, activation: str|None) per layer.
    """
    x_ref = refs[0]
    o_ref = refs[-1]
    param_refs = refs[1:-1]

    x_bf16 = x_ref[...].astype(jnp.bfloat16)   # reused MXU operand for skip dots
    curr = x_ref[...].astype(jnp.float32)      # running activation, kept in f32

    idx = 0
    for has_skip, activation in layer_meta:
        w_main = param_refs[idx][...]
        idx += 1
        # bf16 MXU operands, f32 accumulation.
        y = jnp.dot(curr.astype(jnp.bfloat16), w_main,
                    preferred_element_type=jnp.float32)
        if has_skip:
            # cat(curr, x) @ W  ==  curr @ W_top + x @ W_bottom
            w_skip = param_refs[idx][...]
            idx += 1
            y = y + jnp.dot(x_bf16, w_skip, preferred_element_type=jnp.float32)
        b = param_refs[idx][...]
        idx += 1
        y = y + b.astype(jnp.float32)          # (1, Dout) broadcast add
        curr = _apply_activation(y, activation)

    o_ref[...] = curr.astype(o_ref.dtype)


def _round_up(n, m):
    return ((n + m - 1) // m) * m


def mlp_forward(x, params, skip_lst, *, tile_b=512):
    """Fused Pallas MLP forward.

    params: list of (w, b, activation); w has shape (in_features, out_features)
    (already transposed relative to torch.nn.Linear.weight), b is (1, out).
    """
    B, num_input = x.shape
    num_output = params[-1][0].shape[1]
    skip_set = set(skip_lst)

    # ---- batch tiling ("parallel" grid axis) ------------------------------
    tile_b = min(tile_b, _round_up(B, 8))      # sublane-aligned tile
    B_pad = _round_up(B, tile_b)
    if B_pad != B:
        x_in = jnp.zeros((B_pad, num_input), x.dtype).at[:B].set(x)
    else:
        x_in = x
    grid = (B_pad // tile_b,)

    # ---- flatten params; split skip-layer weights into (top, bottom) ------
    layer_meta = []
    flat_inputs = [x_in]
    in_specs = [pl.BlockSpec((tile_b, num_input), lambda i: (i, 0))]
    prev_width = num_input
    flops = 0
    transcendentals = 0
    for i, (w, b, acti) in enumerate(params):
        din, dout = w.shape
        w_bf16 = w.astype(jnp.bfloat16)        # halve weight DMA bytes
        has_skip = i in skip_set
        if has_skip:
            assert din == prev_width + num_input, (din, prev_width, num_input)
            w_main, w_skip = w_bf16[:prev_width], w_bf16[prev_width:]
            flat_inputs += [w_main, w_skip]
            in_specs += [
                pl.BlockSpec(w_main.shape, lambda i: (0, 0)),
                pl.BlockSpec(w_skip.shape, lambda i: (0, 0)),
            ]
        else:
            assert din == prev_width, (din, prev_width)
            flat_inputs.append(w_bf16)
            in_specs.append(pl.BlockSpec(w_bf16.shape, lambda i: (0, 0)))
        b2 = b.reshape(1, dout).astype(jnp.float32)
        flat_inputs.append(b2)
        in_specs.append(pl.BlockSpec((1, dout), lambda i: (0, 0)))

        layer_meta.append((has_skip, acti))
        flops += 2 * B_pad * din * dout
        if acti in ("Tanh", "Sigmoid"):
            transcendentals += B_pad * dout
        prev_width = dout

    bytes_accessed = sum(int(a.size) * a.dtype.itemsize for a in flat_inputs)
    bytes_accessed += B_pad * num_output * jnp.dtype(x.dtype).itemsize

    kernel = functools.partial(_mlp_fused_kernel, layer_meta=tuple(layer_meta))
    out = pl.pallas_call(
        kernel,
        out_shape=jax.ShapeDtypeStruct((B_pad, num_output), x.dtype),
        grid=grid,
        in_specs=in_specs,
        out_specs=pl.BlockSpec((tile_b, num_output), lambda i: (i, 0)),
        compiler_params=pltpu.CompilerParams(
            dimension_semantics=("parallel",)),
        cost_estimate=pl.CostEstimate(
            flops=flops,
            transcendentals=transcendentals,
            bytes_accessed=bytes_accessed),
    )(*flat_inputs)
    return out[:B]


# ---------------------------------------------------------------------------
# MLP parameter construction (deterministic, mirrors the PyTorch __init__)
# ---------------------------------------------------------------------------
def init_mlp_params(key, num_input, num_output, num_neurons, depth, skip_lst,
                    body_acti, last_acti, dtype=jnp.float32):
    params = []   # list of (w, b, activation)
    last_num_output = num_input
    for i in range(depth):
        if i == depth - 1:
            next_num_output = num_output
            next_acti = last_acti
        else:
            next_num_output = num_neurons
            next_acti = body_acti
        if i in skip_lst:
            last_num_output += num_input
        key, kw, kb = jax.random.split(key, 3)
        # PyTorch nn.Linear default init: U(-1/sqrt(fan_in), 1/sqrt(fan_in))
        bound = 1.0 / float(jnp.sqrt(jnp.array(last_num_output, jnp.float32)))
        w = jax.random.uniform(kw, (last_num_output, next_num_output),
                               dtype=dtype, minval=-bound, maxval=bound)
        b = jax.random.uniform(kb, (1, next_num_output),
                               dtype=dtype, minval=-bound, maxval=bound)
        params.append((w, b, next_acti))
        last_num_output = next_num_output
    return params


# ---------------------------------------------------------------------------
# Pure-JAX references for sanity checking
# ---------------------------------------------------------------------------
def mlp_forward_ref(x, params, skip_lst, matmul_dtype=jnp.float32):
    curr = x.astype(jnp.float32)
    x32 = curr
    for i, (w, b, acti) in enumerate(params):
        if i in skip_lst:
            curr = jnp.concatenate((curr, x32), axis=1)   # torch.cat(dim=1)
        y = jnp.dot(curr.astype(matmul_dtype), w.astype(matmul_dtype),
                    preferred_element_type=jnp.float32) + b.reshape(1, -1)
        curr = _apply_activation(y, acti)
    return curr.astype(x.dtype)


# ---------------------------------------------------------------------------
if __name__ == "__main__":
    # Module configuration (small, consistent with the forward pass)
    num_input, num_output, num_neurons = 16, 8, 32
    depth = 4
    skip_lst = [2]
    body_acti, last_acti = "ReLU", None
    batch = 8

    key = jax.random.PRNGKey(0)
    key, kx = jax.random.split(key)
    x = jax.random.normal(kx, (batch, num_input), dtype=jnp.float32)

    params = init_mlp_params(key, num_input, num_output, num_neurons, depth,
                             skip_lst, body_acti, last_acti)

    out = mlp_forward(x, params, skip_lst)
    out = jax.block_until_ready(out)
    assert out.shape == (batch, num_output), out.shape

    # Reference with identical matmul numerics (bf16 operands, f32 accum):
    ref_bf16 = mlp_forward_ref(x, params, skip_lst, matmul_dtype=jnp.bfloat16)
    assert jnp.allclose(out, ref_bf16, atol=1e-3, rtol=1e-3), \
        "mismatch vs. bf16-matched reference"

    # Full-f32 reference (PyTorch-equivalent math); loose tol for bf16 MXU ops:
    ref_f32 = mlp_forward_ref(x, params, skip_lst, matmul_dtype=jnp.float32)
    assert jnp.allclose(out, ref_f32, atol=5e-2, rtol=5e-2), \
        "mismatch vs. f32 reference"

    print("KERNEL_OK")
</pallas_src>

<mosaic_0001>
module attributes {stable_mosaic.version = 11 : i64} {
  func.func @_mlp_fused_kernel(%arg0: i32, %arg1: memref<8x16xf32, #tpu.memory_space<vmem>>, %arg2: memref<16x32xbf16, #tpu.memory_space<vmem>>, %arg3: memref<1x32xf32, #tpu.memory_space<vmem>>, %arg4: memref<32x32xbf16, #tpu.memory_space<vmem>>, %arg5: memref<1x32xf32, #tpu.memory_space<vmem>>, %arg6: memref<32x32xbf16, #tpu.memory_space<vmem>>, %arg7: memref<16x32xbf16, #tpu.memory_space<vmem>>, %arg8: memref<1x32xf32, #tpu.memory_space<vmem>>, %arg9: memref<32x8xbf16, #tpu.memory_space<vmem>>, %arg10: memref<1x8xf32, #tpu.memory_space<vmem>>, %arg11: memref<8x8xf32, #tpu.memory_space<vmem>>) attributes {dimension_semantics = [#tpu.dimension_semantics<parallel>], iteration_bounds = array<i64: 1>, scalar_prefetch = 0 : i64, scratch_operands = 0 : i64, tpu.core_type = #tpu.core_type<tc>, window_params = [{transform_indices = @transform_0, window_bounds = array<i64: 8, 16>}, {pipeline_mode = #tpu.pipeline_mode<synchronous>, transform_indices = @transform_1, window_bounds = array<i64: 16, 32>}, {pipeline_mode = #tpu.pipeline_mode<synchronous>, transform_indices = @transform_2, window_bounds = array<i64: 1, 32>}, {pipeline_mode = #tpu.pipeline_mode<synchronous>, transform_indices = @transform_3, window_bounds = array<i64: 32, 32>}, {pipeline_mode = #tpu.pipeline_mode<synchronous>, transform_indices = @transform_4, window_bounds = array<i64: 1, 32>}, {pipeline_mode = #tpu.pipeline_mode<synchronous>, transform_indices = @transform_5, window_bounds = array<i64: 32, 32>}, {pipeline_mode = #tpu.pipeline_mode<synchronous>, transform_indices = @transform_6, window_bounds = array<i64: 16, 32>}, {pipeline_mode = #tpu.pipeline_mode<synchronous>, transform_indices = @transform_7, window_bounds = array<i64: 1, 32>}, {pipeline_mode = #tpu.pipeline_mode<synchronous>, transform_indices = @transform_8, window_bounds = array<i64: 32, 8>}, {pipeline_mode = #tpu.pipeline_mode<synchronous>, transform_indices = @transform_9, window_bounds = array<i64: 1, 8>}, {transform_indices = @transform_10, window_bounds = array<i64: 8, 8>}]} {
    %c0 = arith.constant 0 : index
    %c0_0 = arith.constant 0 : index
    %0 = vector.load %arg1[%c0, %c0_0] : memref<8x16xf32, #tpu.memory_space<vmem>>, vector<8x16xf32>
    %1 = arith.truncf %0 : vector<8x16xf32> to vector<8x16xbf16>
    %c0_1 = arith.constant 0 : index
    %c0_2 = arith.constant 0 : index
    %2 = vector.load %arg1[%c0_1, %c0_2] : memref<8x16xf32, #tpu.memory_space<vmem>>, vector<8x16xf32>
    %c0_3 = arith.constant 0 : index
    %c0_4 = arith.constant 0 : index
    %3 = vector.load %arg2[%c0_3, %c0_4] : memref<16x32xbf16, #tpu.memory_space<vmem>>, vector<16x32xbf16>
    %4 = arith.truncf %2 : vector<8x16xf32> to vector<8x16xbf16>
    %cst = arith.constant dense<0.000000e+00> : vector<8x32xf32>
    %5 = tpu.matmul %4, %3, %cst {dimension_numbers = #tpu.dot_dimension_numbers<[1], [0], [0], [1], [0, 0, 1, 1], [], []>} : vector<8x16xbf16>, vector<16x32xbf16>, vector<8x32xf32> -> vector<8x32xf32>
    %c0_5 = arith.constant 0 : index
    %c0_6 = arith.constant 0 : index
    %6 = vector.load %arg3[%c0_5, %c0_6] : memref<1x32xf32, #tpu.memory_space<vmem>>, vector<1x32xf32>
    %7 = vector.broadcast %6 : vector<1x32xf32> to vector<8x32xf32>
    %8 = arith.addf %5, %7 : vector<8x32xf32>
    %cst_7 = arith.constant 0.000000e+00 : f32
    %9 = vector.broadcast %cst_7 : f32 to vector<8x32xf32>
    %10 = arith.maximumf %8, %9 : vector<8x32xf32>
    %c0_8 = arith.constant 0 : index
    %c0_9 = arith.constant 0 : index
    %11 = vector.load %arg4[%c0_8, %c0_9] : memref<32x32xbf16, #tpu.memory_space<vmem>>, vector<32x32xbf16>
    %12 = arith.truncf %10 : vector<8x32xf32> to vector<8x32xbf16>
    %cst_10 = arith.constant dense<0.000000e+00> : vector<8x32xf32>
    %13 = tpu.matmul %12, %11, %cst_10 {dimension_numbers = #tpu.dot_dimension_numbers<[1], [0], [0], [1], [0, 0, 1, 1], [], []>} : vector<8x32xbf16>, vector<32x32xbf16>, vector<8x32xf32> -> vector<8x32xf32>
    %c0_11 = arith.constant 0 : index
    %c0_12 = arith.constant 0 : index
    %14 = vector.load %arg5[%c0_11, %c0_12] : memref<1x32xf32, #tpu.memory_space<vmem>>, vector<1x32xf32>
    %15 = vector.broadcast %14 : vector<1x32xf32> to vector<8x32xf32>
    %16 = arith.addf %13, %15 : vector<8x32xf32>
    %cst_13 = arith.constant 0.000000e+00 : f32
    %17 = vector.broadcast %cst_13 : f32 to vector<8x32xf32>
    %18 = arith.maximumf %16, %17 : vector<8x32xf32>
    %c0_14 = arith.constant 0 : index
    %c0_15 = arith.constant 0 : index
    %19 = vector.load %arg6[%c0_14, %c0_15] : memref<32x32xbf16, #tpu.memory_space<vmem>>, vector<32x32xbf16>
    %20 = arith.truncf %18 : vector<8x32xf32> to vector<8x32xbf16>
    %cst_16 = arith.constant dense<0.000000e+00> : vector<8x32xf32>
    %21 = tpu.matmul %20, %19, %cst_16 {dimension_numbers = #tpu.dot_dimension_numbers<[1], [0], [0], [1], [0, 0, 1, 1], [], []>} : vector<8x32xbf16>, vector<32x32xbf16>, vector<8x32xf32> -> vector<8x32xf32>
    %c0_17 = arith.constant 0 : index
    %c0_18 = arith.constant 0 : index
    %22 = vector.load %arg7[%c0_17, %c0_18] : memref<16x32xbf16, #tpu.memory_space<vmem>>, vector<16x32xbf16>
    %cst_19 = arith.constant dense<0.000000e+00> : vector<8x32xf32>
    %23 = tpu.matmul %1, %22, %cst_19 {dimension_numbers = #tpu.dot_dimension_numbers<[1], [0], [0], [1], [0, 0, 1, 1], [], []>} : vector<8x16xbf16>, vector<16x32xbf16>, vector<8x32xf32> -> vector<8x32xf32>
    %24 = arith.addf %21, %23 : vector<8x32xf32>
    %c0_20 = arith.constant 0 : index
    %c0_21 = arith.constant 0 : index
    %25 = vector.load %arg8[%c0_20, %c0_21] : memref<1x32xf32, #tpu.memory_space<vmem>>, vector<1x32xf32>
    %26 = vector.broadcast %25 : vector<1x32xf32> to vector<8x32xf32>
    %27 = arith.addf %24, %26 : vector<8x32xf32>
    %cst_22 = arith.constant 0.000000e+00 : f32
    %28 = vector.broadcast %cst_22 : f32 to vector<8x32xf32>
    %29 = arith.maximumf %27, %28 : vector<8x32xf32>
    %c0_23 = arith.constant 0 : index
    %c0_24 = arith.constant 0 : index
    %30 = vector.load %arg9[%c0_23, %c0_24] : memref<32x8xbf16, #tpu.memory_space<vmem>>, vector<32x8xbf16>
    %31 = arith.truncf %29 : vector<8x32xf32> to vector<8x32xbf16>
    %cst_25 = arith.constant dense<0.000000e+00> : vector<8x8xf32>
    %32 = tpu.matmul %31, %30, %cst_25 {dimension_numbers = #tpu.dot_dimension_numbers<[1], [0], [0], [1], [0, 0, 1, 1], [], []>} : vector<8x32xbf16>, vector<32x8xbf16>, vector<8x8xf32> -> vector<8x8xf32>
    %c0_26 = arith.constant 0 : index
    %c0_27 = arith.constant 0 : index
    %33 = vector.load %arg10[%c0_26, %c0_27] : memref<1x8xf32, #tpu.memory_space<vmem>>, vector<1x8xf32>
    %34 = vector.broadcast %33 : vector<1x8xf32> to vector<8x8xf32>
    %35 = arith.addf %32, %34 : vector<8x8xf32>
    %c0_28 = arith.constant 0 : index
    %c0_29 = arith.constant 0 : index
    %36 = vector.load %arg11[%c0_28, %c0_29] : memref<8x8xf32, #tpu.memory_space<vmem>>, vector<8x8xf32>
    tpu.vector_store %arg11[%c0_28, %c0_29], %35 {strides = array<i32>} : memref<8x8xf32, #tpu.memory_space<vmem>>, vector<8x8xf32>,
    return
  }
  func.func @transform_0(%arg0: i32) -> (i32, i32) {
    %c0_i32 = arith.constant 0 : i32
    %c0_i32_0 = arith.constant 0 : i32
    return %arg0, %c0_i32 : i32, i32
  }
  func.func @transform_1(%arg0: i32) -> (i32, i32) {
    %c0_i32 = arith.constant 0 : i32
    %c0_i32_0 = arith.constant 0 : i32
    %c0_i32_1 = arith.constant 0 : i32
    return %c0_i32, %c0_i32_0 : i32, i32
  }
  func.func @transform_2(%arg0: i32) -> (i32, i32) {
    %c0_i32 = arith.constant 0 : i32
    %c0_i32_0 = arith.constant 0 : i32
    %c0_i32_1 = arith.constant 0 : i32
    return %c0_i32, %c0_i32_0 : i32, i32
  }
  func.func @transform_3(%arg0: i32) -> (i32, i32) {
    %c0_i32 = arith.constant 0 : i32
    %c0_i32_0 = arith.constant 0 : i32
    %c0_i32_1 = arith.constant 0 : i32
    return %c0_i32, %c0_i32_0 : i32, i32
  }
  func.func @transform_4(%arg0: i32) -> (i32, i32) {
    %c0_i32 = arith.constant 0 : i32
    %c0_i32_0 = arith.constant 0 : i32
    %c0_i32_1 = arith.constant 0 : i32
    return %c0_i32, %c0_i32_0 : i32, i32
  }
  func.func @transform_5(%arg0: i32) -> (i32, i32) {
    %c0_i32 = arith.constant 0 : i32
    %c0_i32_0 = arith.constant 0 : i32
    %c0_i32_1 = arith.constant 0 : i32
    return %c0_i32, %c0_i32_0 : i32, i32
  }
  func.func @transform_6(%arg0: i32) -> (i32, i32) {
    %c0_i32 = arith.constant 0 : i32
    %c0_i32_0 = arith.constant 0 : i32
    %c0_i32_1 = arith.constant 0 : i32
    return %c0_i32, %c0_i32_0 : i32, i32
  }
  func.func @transform_7(%arg0: i32) -> (i32, i32) {
    %c0_i32 = arith.constant 0 : i32
    %c0_i32_0 = arith.constant 0 : i32
    %c0_i32_1 = arith.constant 0 : i32
    return %c0_i32, %c0_i32_0 : i32, i32
  }
  func.func @transform_8(%arg0: i32) -> (i32, i32) {
    %c0_i32 = arith.constant 0 : i32
    %c0_i32_0 = arith.constant 0 : i32
    %c0_i32_1 = arith.constant 0 : i32
    return %c0_i32, %c0_i32_0 : i32, i32
  }
  func.func @transform_9(%arg0: i32) -> (i32, i32) {
    %c0_i32 = arith.constant 0 : i32
    %c0_i32_0 = arith.constant 0 : i32
    %c0_i32_1 = arith.constant 0 : i32
    return %c0_i32, %c0_i32_0 : i32, i32
  }
  func.func @transform_10(%arg0: i32) -> (i32, i32) {
    %c0_i32 = arith.constant 0 : i32
    %c0_i32_0 = arith.constant 0 : i32
    return %arg0, %c0_i32 : i32, i32
  }
}

</mosaic_0001>

<bundles_post_ra>
// kernel: tpu_custom_call.1
= control target key start
LH: loop header
LB: loop body
LE: loop exit
PB: predicated region body
PF: predicated region fallthrough
CT: control target
= control target key end

     0   :  { %15 = vsyncpa [#allocation3], 0  ;;  %s732_s0 = inlined_call_operand.hbm [shape: f32[8,16], index: 0, kind: input, shape index: {}]   ;;  %s733_s1 = inlined_call_operand.hbm [shape: bf16[16,32], index: 1, kind: input, shape index: {}]   ;;  %s734_s2 = inlined_call_operand.vmem [shape: f32[1,32], index: 2, kind: input, shape index: {}]   ;;  %s735_s3 = inlined_call_operand.vmem [shape: bf16[32,32], index: 3, kind: input, shape index: {}]   ;;  %s736_s4 = inlined_call_operand.vmem [shape: f32[1,32], index: 4, kind: input, shape index: {}]   ;;  %s737_s5 = inlined_call_operand.vmem [shape: bf16[32,32], index: 5, kind: input, shape index: {}]   ;;  %s738_s6 = inlined_call_operand.vmem [shape: bf16[16,32], index: 6, kind: input, shape index: {}]   ;;  %s739_s7 = inlined_call_operand.hbm [shape: f32[1,32], index: 7, kind: input, shape index: {}]   ;;  %s740_s8 = inlined_call_operand.vmem [shape: bf16[32,8], index: 8, kind: input, shape index: {}]   ;;  %s741_s9 = inlined_call_operand.vmem [shape: f32[1,8], index: 9, kind: input, shape index: {}]   ;;  %s742_s10 = inlined_call_operand.hbm [shape: f32[8,8], index: 10, kind: output, shape index: {}]  }
   0x1   :  { %16 = vsyncpa [#allocation6], 0 }
   0x2   :  { %17 = vsyncpa [#allocation4], 0  ;;  %s583_s13 = smov [#allocation5]   ;;  %s489_s17 = scalar_lea.hbm %s733_s1, 128 }
   0x3   :  { %s33_s14 = sshll.u32 %s583_s13, 4  ;;  %p490_p0 = scmp.ne.s32.totalorder %s733_s1, %s489_s17  ;;  %s34_s14 = int_to_ptr.vmem [resolvable:$true] %s33_s14 }
   0x4   :  { %p493_p1 = scmp.lt.u32.totalorder %s489_s17, %s733_s1 }
   0x6   :  { %p495_p2 = pnand %p493_p1, %p490_p0 }
   0x8   :  { %498 = shalt.err (!%p495_p2)
}
   0x9   :  { %s499_s22 = scalar_lea.vmem %s34_s14, 128  ;;  %p504_p4 = scmp.lt.s32.totalorder %s34_s14, %s34_s14 }
   0xa   :  { %p500_p3 = scmp.ne.s32.totalorder %s34_s14, %s499_s22  ;;  %p505_p5 = scmp.lt.s32.totalorder %s499_s22, %s499_s22 }
   0xc   :  { %p506_p6 = por %p505_p5, %p504_p4 }
   0xe   :  { %p507_p7 = pnand %p506_p6, %p500_p3 }
  0x10   :  { %510 = shalt.err (!%p507_p7)
}
  0x11   :  { %s584_s23 = smov 64   ;;  %s585_s24 = smov 4  }
  0x12   :  { %39 = dma.hbm_to_vmem [thread:$0]  %s733_s1, 128, %s34_s14, [#allocation6], %s584_s23, %s584_s23, %s585_s24  }
  0x13   :  { %s586_s27 = smov [#allocation2]   ;;  %s587_s29 = smov [#allocation7]  }
  0x14   :  { %s24_s28 = sshll.u32 %s586_s27, 4  ;;  %s56_s30 = sshll.u32 %s587_s29, 4  ;;  %s25_s28 = int_to_ptr.vmem [resolvable:$true] %s24_s28  ;;  %s57_s30 = int_to_ptr.vmem [resolvable:$true] %s56_s30 }
  0x15   :  { %s511_s13 = scalar_lea.hbm %s732_s0, 128 }
  0x16   :  { %p512_p8 = scmp.ne.s32.totalorder %s732_s0, %s511_s13  ;;  %p515_p9 = scmp.lt.u32.totalorder %s511_s13, %s732_s0 }
  0x18   :  { %p517_p10 = pnand %p515_p9, %p512_p8 }
  0x1a   :  { %520 = shalt.err (!%p517_p10)
}
  0x1b   :  { %s521_s1 = scalar_lea.vmem %s25_s28, 128  ;;  %p526_p12 = scmp.lt.s32.totalorder %s25_s28, %s25_s28 }
  0x1c   :  { %p522_p11 = scmp.ne.s32.totalorder %s25_s28, %s521_s1  ;;  %p527_p13 = scmp.lt.s32.totalorder %s521_s1, %s521_s1 }
  0x1e   :  { %p528_p0 = por %p527_p13, %p526_p12 }
  0x20   :  { %p529_p1 = pnand %p528_p0, %p522_p11 }
  0x22   :  { %532 = shalt.err (!%p529_p1)
}
  0x23   :  { %27 = dma.hbm_to_vmem [thread:$0]  %s732_s0, 128, %s25_s28, [#allocation3]  }
  0x24   :  { %s533_s22 = scalar_lea.hbm %s739_s7, 16 }
  0x25   :  { %p534_p2 = scmp.ne.s32.totalorder %s739_s7, %s533_s22  ;;  %p537_p3 = scmp.lt.u32.totalorder %s533_s22, %s739_s7 }
  0x27   :  { %p539_p4 = pnand %p537_p3, %p534_p2 }
  0x29   :  { %542 = shalt.err (!%p539_p4)
}
  0x2a   :  { %s543_s27 = scalar_lea.vmem %s57_s30, 16  ;;  %s547_s29 = scalar_lea.vmem %s57_s30, 32 }
  0x2b   :  { %p544_p5 = scmp.ne.s32.totalorder %s57_s30, %s543_s27  ;;  %p548_p6 = scmp.lt.s32.totalorder %s57_s30, %s57_s30 }
  0x2c   :  { %p549_p7 = scmp.lt.s32.totalorder %s547_s29, %s543_s27 }
  0x2e   :  { %p550_p8 = por %p549_p7, %p548_p6 }
  0x30   :  { %p551_p9 = pnand %p550_p8, %p544_p5 }
  0x32   :  { %554 = shalt.err (!%p551_p9)
}
  0x33   :  { %59 = dma.hbm_to_vmem [thread:$0]  %s739_s7, 16, %s57_s30, [#allocation6]  }
  0x34   :  { %577 = dma.done.wait [#allocation3], 128  }
  0x35   :  { %578 = vsyncadd [#allocation3], 4294967168 }
  0x36   :  { %579 = dma.done.wait [#allocation6], 144  }
  0x37   :  { %580 = vsyncadd [#allocation6], 4294967152  ;;  %v588_v0 = vmov 0.0   ;;  %vm589_vm0 = vmmov 0   ;;  %v481_v1 = vld [vmem:[#allocation5] sm:$0xff]   ;;  %v74_v2 = vld [vmem:[#allocation2] sm:$0xff] }
  0x38   :  { %437 = vmatprep.subr.bf16.mxu0 %v588_v0  ;;  %439 = vmatprep.mubr.msk.bf16.mxu0 %vm589_vm0, %v588_v0  ;;  %vm91_vm1 = vcmask 130048   ;;  %v75_v3 = vpack.c.bf16 %v74_v2, %v74_v2  ;;  %v482_v4 = vld [vmem:[%s735_s3] sm:$0xff]   ;;  %v483_v5 = vld [vmem:[%s735_s3 + $0x8] sm:$0xff]   ;;  %vm160_vm2 = vcmask 261120   ;;  %v419_v32 = vld [vmem:[#allocation7] ss:$0 sm:$0xff] }
  0x39   :  { %443 = vmatprep.subr.bf16.mxu1 %v588_v0  ;;  %447 = vmatprep.mubr.msk.bf16.mxu1 %vm589_vm0, %v588_v0  ;;  %v484_v6 = vld [vmem:[%s738_s6] sm:$0xff]   ;;  %v486_v16 = vld [vmem:[%s737_s5 + $0x8] sm:$0xff]   ;;  %s590_s23 = smov [#allocation8]   ;;  %vm389_vm3 = vcmask 64512  }
  0x3a   :  { %438 = vmatpush3.bf16.msra.mxu0 %v481_v1  ;;  %444 = vmatpush3.bf16.msra.mxu1 %v482_v4  ;;  %v407_v7 = vld [vmem:[%s734_s2] ss:$0 sm:$0xff]  ;;  %v488_v30 = vld [vmem:[%s740_s8 + $0x8] sm:$0xff]   ;;  %s397_s24 = sshll.u32 %s590_s23, 4  ;;  %s398_s24 = int_to_ptr.vmem [resolvable:$true] %s397_s24 }
  0x3b   :  { %451 = vmatprep.subr.bf16.mxu0 %v588_v0  ;;  %445 = vmatprep.subr.bf16.mxu1 %v588_v0  ;;  %v485_v14 = vld [vmem:[%s737_s5] sm:$0xff]   ;;  %p560_p11 = scmp.lt.s32.totalorder %s398_s24, %s398_s24 }
  0x3c   :  { %v410_v21 = vld [vmem:[%s736_s4] ss:$0 sm:$0xff] }
  0x3d   :  { %440 = vmatmul.mubr.msk.bf16.vlgmr.msra.gmra.mrb[0].mxu0 %vm91_vm1, %v75_v3  ;;  %v487_v29 = vld [vmem:[%s740_s8] sm:$0xff]   ;;  %s555_s8 = scalar_lea.vmem %s398_s24, 128 }
  0x3e   :  { %453 = vmatprep.mubr.msk.bf16.mxu0 %vm589_vm0, %v588_v0  ;;  %446 = vmatpush3.bf16.msra.mxu1 %v483_v5  ;;  %v420_v40 = vld [vmem:[%s741_s9] ss:$0 sm:$0xff]  ;;  %p556_p10 = scmp.ne.s32.totalorder %s398_s24, %s555_s8  ;;  %p561_p12 = scmp.lt.s32.totalorder %s555_s8, %s555_s8 }
  0x3f   :  { %457 = vmatprep.subr.bf16.mxu1 %v588_v0  ;;  %452 = vmatpush3.bf16.msra.mxu0 %v484_v6 }
  0x40   :  { %465 = vmatprep.subr.bf16.mxu0 %v588_v0  ;;  %p562_p13 = por %p561_p12, %p560_p11 }
  0x42   :  { %p563_p0 = pnand %p562_p13, %p556_p10 }
  0x45   :  { %454 = vmatmul.mubr.msk.bf16.vlgmr.msra.gmra.mrb[4].mxu0 %vm91_vm1, %v75_v3 }
  0x46   :  { %469 = vmatprep.mubr.msk.bf16.mxu0 %vm589_vm0, %v588_v0  ;;  %466 = vmatpush3.bf16.msra.mxu0 %v487_v29 }
  0x47   :  { %467 = vmatprep.subr.bf16.mxu0 %v588_v0 }
  0x4a   :  { %468 = vmatpush3.bf16.msra.mxu0 %v488_v30 }
 0x110   :  { %v129_v8 = vpop.f32.mrb[0].mxu0 }
 0x111   :  { %v130_v9 = vadd.f32 %v407_v7, %v129_v8  ;;  %v441_v10 = vpop.f32.mrb[1].mxu0 }
 0x112   :  { %v132_v11 = vpop.f32.mrb[2].mxu0 }
 0x113   :  { %v135_v12 = vmax.f32 %v130_v9, 0.0  ;;  %v442_v13 = vpop.f32.mrb[3].mxu0 }
 0x115   :  { %v140_v15 = vpack.c.bf16 %v135_v12, %v135_v12 }
 0x117   :  { %448 = vmatmul.mubr.msk.bf16.vlgmr.msra.gmra.mrb[0].mxu1 %vm160_vm2, %v140_v15 }
 0x118   :  { %458 = vmatpush3.bf16.msra.mxu1 %v485_v14  ;;  %461 = vmatprep.mubr.msk.bf16.mxu1 %vm589_vm0, %v588_v0  ;;  %v252_v17 = vpop.f32.mrb[4].mxu0 }
 0x119   :  { %459 = vmatprep.subr.bf16.mxu1 %v588_v0  ;;  %v455_v18 = vpop.f32.mrb[5].mxu0 }
 0x11a   :  { %v255_v19 = vpop.f32.mrb[6].mxu0 }
 0x11b   :  { %v456_v20 = vpop.f32.mrb[7].mxu0 }
 0x11c   :  { %460 = vmatpush3.bf16.msra.mxu1 %v486_v16 }
 0x1ea   :  { %v198_v22 = vpop.f32.mrb[0].mxu1 }
 0x1eb   :  { %v199_v23 = vadd.f32 %v410_v21, %v198_v22  ;;  %v449_v24 = vpop.f32.mrb[1].mxu1 }
 0x1ec   :  { %v201_v25 = vpop.f32.mrb[2].mxu1 }
 0x1ed   :  { %v204_v26 = vmax.f32 %v199_v23, 0.0  ;;  %v450_v27 = vpop.f32.mrb[3].mxu1 }
 0x1ef   :  { %v209_v28 = vpack.c.bf16 %v204_v26, %v204_v26 }
 0x1f1   :  { %462 = vmatmul.mubr.msk.bf16.vlgmr.msra.gmra.mrb[4].mxu1 %vm160_vm2, %v209_v28 }
 0x2c4   :  { %v307_v31 = vpop.f32.mrb[4].mxu1 }
 0x2c5   :  { %v308_v33 = vadd.f32 %v307_v31, %v252_v17  ;;  %v463_v34 = vpop.f32.mrb[5].mxu1 }
 0x2c6   :  { %v310_v35 = vpop.f32.mrb[6].mxu1 }
 0x2c7   :  { %v320_v36 = vadd.f32 %v419_v32, %v308_v33  ;;  %v464_v37 = vpop.f32.mrb[7].mxu1 }
 0x2c9   :  { %v321_v38 = vmax.f32 %v320_v36, 0.0 }
 0x2cb   :  { %v326_v39 = vpack.c.bf16 %v321_v38, %v321_v38 }
 0x2cd   :  { %470 = vmatmul.mubr.msk.bf16.vlgmr.msra.gmra.mrb[8].mxu0 %vm160_vm2, %v326_v39 }
 0x3a0   :  { %v383_v41 = vpop.f32.mrb[8].mxu0 }
 0x3a1   :  { %v384_v42 = vadd.f32 %v420_v40, %v383_v41  ;;  %v471_v43 = vpop.f32.mrb[9].mxu0 }
 0x3a2   :  { %v386_v44 = vpop.f32.mrb[10].mxu0 }
 0x3a3   :  { %v472_v45 = vpop.f32.mrb[11].mxu0  ;;  %390 = vst.msk [vmem:[#allocation8] sm:$0xff] %vm389_vm3, %v384_v42 }
 0x3a4   :  { %566 = shalt.err (!%p563_p0)
}
 0x3a5   :  { %s567_s9 = scalar_lea.hbm %s742_s10, 128 }
 0x3a6   :  { %p568_p1 = scmp.ne.s32.totalorder %s742_s10, %s567_s9  ;;  %p571_p2 = scmp.lt.u32.totalorder %s567_s9, %s742_s10 }
 0x3a8   :  { %p573_p3 = pnand %p571_p2, %p568_p1 }
 0x3aa   :  { %576 = shalt.err (!%p573_p3)
}
 0x3ab   :  { %400 = dma.vmem_to_hbm [thread:$0]  %s398_s24, 128, %s742_s10, [#allocation4]  }
 0x3ac   :  { %581 = dma.done.wait [#allocation4], 128  }
 0x3ad   :  { %582 = vsyncadd [#allocation4], 4294967168 }
 0x3ae   :  { %404 = vsyncpa [#allocation3], 1 }
 0x3af   :  { %405 = vsyncpa [#allocation6], 1 }
 0x3b0   :  { %406 = vsyncpa [#allocation4], 1 }

</bundles_post_ra>
